<compile_context>
chip_gen: v5e
topology: v5e:2x2
jax: 0.10.0
libtpu: 0.0.40
codegen_flags: <defaults>
</compile_context>

<pallas_src>
import functools
from math import gcd

import jax
import jax.numpy as jnp
from jax.experimental import pallas as pl
from jax.experimental.pallas import tpu as pltpu


def _round_up(x, m):
    return ((x + m - 1) // m) * m


# ---------------------------------------------------------------------------
# Fused kernel: (folded group-mean/level-select/fc8) -> ReLU -> fc9 -> ReLU
# ---------------------------------------------------------------------------
def _mlp_kernel(cols_ref, wf_ref, b8_ref, w9_ref, b9_ref, o_ref):
    h = jnp.dot(cols_ref[...], wf_ref[...], preferred_element_type=jnp.float32)
    h = jnp.maximum(h + b8_ref[...], 0.0)
    h = jnp.dot(h.astype(w9_ref.dtype), w9_ref[...],
                preferred_element_type=jnp.float32)
    o_ref[...] = jnp.maximum(h + b9_ref[...], 0.0).astype(o_ref.dtype)


def _fused_mlp(cols_pad, w_fold, b8p, w9p, b9p, *, tile_n):
    n_pad, sum_c = cols_pad.shape
    d_pad = w_fold.shape[1]
    grid_steps = n_pad // tile_n

    col_idx = lambda i: (i, 0)
    const_idx = lambda i: (0, 0)

    # Deeper pipelining on the only proposal-tiled input when there are
    # several short grid steps (hides DMA latency).  Fallback keeps the
    # default double buffering if this JAX has no pipeline_mode/Buffered.
    col_spec = pl.BlockSpec((tile_n, sum_c), col_idx)
    if grid_steps > 1:
        try:
            col_spec = pl.BlockSpec((tile_n, sum_c), col_idx,
                                    pipeline_mode=pl.Buffered(3))
        except Exception:
            col_spec = pl.BlockSpec((tile_n, sum_c), col_idx)

    in_specs = [
        col_spec,
        pl.BlockSpec((sum_c, d_pad), const_idx),   # W_fold  (resident)
        pl.BlockSpec((1, d_pad), const_idx),       # b8      (resident)
        pl.BlockSpec((d_pad, d_pad), const_idx),   # w9      (resident)
        pl.BlockSpec((1, d_pad), const_idx),       # b9      (resident)
    ]
    out_spec = pl.BlockSpec((tile_n, d_pad), col_idx)

    # Tight VMEM budget: proposal-tiled blocks x buffer depth + resident
    # weights (x2 for default double-buffering of constant-index blocks) +
    # a few MiB headroom.  Cap at 48 MiB -> safe on v7x (64 MiB physical).
    bts = jnp.dtype(cols_pad.dtype).itemsize
    tiled = 3 * tile_n * sum_c * bts + 2 * tile_n * d_pad * 4
    resident = 2 * ((sum_c * d_pad + d_pad * d_pad) * bts + 2 * d_pad * 4)
    vmem_limit = int(min(48 << 20, max(16 << 20, tiled + resident + (4 << 20))))

    return pl.pallas_call(
        _mlp_kernel,
        out_shape=jax.ShapeDtypeStruct((n_pad, d_pad), jnp.float32),
        grid=(grid_steps,),
        in_specs=in_specs,
        out_specs=out_spec,
        compiler_params=pltpu.CompilerParams(
            dimension_semantics=("parallel",),
            vmem_limit_bytes=vmem_limit),
    )(cols_pad, w_fold, b8p, w9p, b9p)


# ---------------------------------------------------------------------------
# Forward pass (matches YOLOV8FeatureExtractor2.forward semantics)
# ---------------------------------------------------------------------------
def yolov8_feature_extractor2_forward(x_levels, idxs, params, *,
                                      tile_n=1024, dtype=jnp.bfloat16):
    # s = gcd of per-level channel counts (== cfg.MODEL.YOLO.OUT_CHANNELS)
    s = functools.reduce(gcd, [int(f.shape[1]) for f in x_levels])
    D = int(params["w8"].shape[1])
    d_pad = _round_up(D, 128)   # lane-dense output width

    # Flatten per-image proposal indices into (image id, global spatial id).
    img_ids = jnp.concatenate(
        [jnp.full((int(idx.shape[0]),), b, jnp.int32)
         for b, idx in enumerate(idxs)])
    gidx = jnp.concatenate([idx.astype(jnp.int32) for idx in idxs])
    n = int(gidx.shape[0])

    # Proposal tiling: multiple of 16 (bf16 sublane packing).  For large N
    # cap the tile at ~N/2 (128-rounded) so grid >= 2 steps (v7x megacore).
    n16 = _round_up(max(n, 1), 16)
    tn = min(tile_n, n16)
    if n16 >= 512:
        tn = min(tn, _round_up((n16 + 1) // 2, 128))
    n_pad = _round_up(n16, tn)

    # Gather only the proposal columns per level (native NCHW, no transpose),
    # pre-masked by level membership, into ONE concatenated buffer.
    # NOTE: out-of-range feat_idx values are clipped and masked to zero rows
    # (sliced results stay correct for valid indices; PyTorch would raise).
    col_parts, avg_blocks = [], []
    off = 0
    for feat in x_levels:
        B, C_l, H, W = (int(v) for v in feat.shape)
        hw = H * W
        x3 = feat.reshape(B, C_l, hw)
        local = jnp.clip(gidx - off, 0, hw - 1)
        in_level = (gidx >= off) & (gidx < off + hw)
        col = x3[img_ids, :, local]                        # (N, C_l)
        col_parts.append(jnp.where(in_level[:, None], col, 0.0))
        g = C_l // s
        avg_blocks.append(
            (jnp.arange(C_l)[:, None] // g == jnp.arange(s)[None, :])
            .astype(jnp.float32) / g)
        off += hw

    cols = jnp.concatenate(col_parts, axis=1).astype(dtype)   # (N, sum_C)
    sum_c = int(cols.shape[1])
    cols_pad = jnp.zeros((n_pad, sum_c), dtype).at[:n].set(cols)

    # Fold (group-mean + level-select) and fc8 into one matrix; zero-pad the
    # output feature dim to d_pad so all in-kernel tiles are 128-lane dense.
    a_full = jnp.concatenate(avg_blocks, axis=0)               # (sum_C, s)
    w_fold = jnp.pad(a_full @ params["w8"].astype(jnp.float32),
                     ((0, 0), (0, d_pad - D))).astype(dtype)
    b8p = jnp.pad(params["b8"].astype(jnp.float32),
                  (0, d_pad - D)).reshape(1, d_pad)
    w9p = jnp.pad(params["w9"].astype(jnp.float32),
                  ((0, d_pad - D), (0, d_pad - D))).astype(dtype)
    b9p = jnp.pad(params["b9"].astype(jnp.float32),
                  (0, d_pad - D)).reshape(1, d_pad)

    out = _fused_mlp(cols_pad, w_fold, b8p, w9p, b9p, tile_n=tn)
    return out[:n, :D]


# ---------------------------------------------------------------------------
# Pure-JAX reference (torch semantics, for correctness check)
# ---------------------------------------------------------------------------
def _reference(x_levels, idxs, params):
    s = functools.reduce(gcd, [int(f.shape[1]) for f in x_levels])
    obj = jnp.concatenate(
        [
            jnp.transpose(f, (0, 2, 3, 1))
            .reshape(f.shape[0], -1, s, f.shape[1] // s)
            .mean(-1)
            for f in x_levels
        ],
        axis=1,
    )
    feats = jnp.concatenate([obj[b][idx] for b, idx in enumerate(idxs)], axis=0)
    h = jnp.maximum(feats @ params["w8"] + params["b8"], 0.0)
    return jnp.maximum(h @ params["w9"] + params["b9"], 0.0)


if __name__ == "__main__":
    key = jax.random.PRNGKey(0)
    k1, k2, k3, k4 = jax.random.split(key, 4)

    B = 2
    # Two FPN-style levels in PyTorch NCHW layout.
    x1 = jax.random.normal(k1, (B, 8, 8, 8), jnp.float32)   # C=8,  H=W=8
    x2 = jax.random.normal(k2, (B, 16, 4, 4), jnp.float32)  # C=16, H=W=4
    x_levels = [x1, x2]

    s = gcd(8, 16)  # = 8  (cfg.MODEL.YOLO.OUT_CHANNELS)
    D = 32          # out_dim = MLP_HEAD_DIM (half_out=False)

    # Deterministic make_fc-style params (uniform weights, zero bias).
    w8 = jax.random.uniform(k3, (s, D), jnp.float32, -1.0, 1.0) * (1.0 / s) ** 0.5
    b8 = jnp.zeros((D,), jnp.float32)
    w9 = jax.random.uniform(k4, (D, D), jnp.float32, -1.0, 1.0) * (1.0 / D) ** 0.5
    b9 = jnp.zeros((D,), jnp.float32)
    params = dict(w8=w8, b8=b8, w9=w9, b9=b9)

    # proposals[b].get_field('feat_idx') -> indices into sum(H*W) = 64 + 16 = 80
    idxs = [
        jnp.array([0, 5, 17, 63], jnp.int32),
        jnp.array([2, 64, 70, 79], jnp.int32),
    ]

    out = yolov8_feature_extractor2_forward(x_levels, idxs, params)
    out = jax.block_until_ready(out)

    ref = _reference(x_levels, idxs, params)
    assert out.shape == (8, D)
    # bf16 inputs/weights with f32 MXU accumulation -> loose-but-meaningful tol.
    assert jnp.allclose(out, ref, atol=5e-2, rtol=5e-2)
    print("KERNEL_OK")
</pallas_src>

<mosaic_0001>
module attributes {stable_mosaic.version = 11 : i64} {
  func.func @_mlp_kernel(%arg0: i32, %arg1: memref<16x24xbf16, #tpu.memory_space<vmem>>, %arg2: memref<24x128xbf16, #tpu.memory_space<vmem>>, %arg3: memref<1x128xf32, #tpu.memory_space<vmem>>, %arg4: memref<128x128xbf16, #tpu.memory_space<vmem>>, %arg5: memref<1x128xf32, #tpu.memory_space<vmem>>, %arg6: memref<16x128xf32, #tpu.memory_space<vmem>>) attributes {dimension_semantics = [#tpu.dimension_semantics<parallel>], iteration_bounds = array<i64: 1>, scalar_prefetch = 0 : i64, scratch_operands = 0 : i64, tpu.core_type = #tpu.core_type<tc>, window_params = [{transform_indices = @transform_0, window_bounds = array<i64: 16, 24>}, {pipeline_mode = #tpu.pipeline_mode<synchronous>, transform_indices = @transform_1, window_bounds = array<i64: 24, 128>}, {pipeline_mode = #tpu.pipeline_mode<synchronous>, transform_indices = @transform_2, window_bounds = array<i64: 1, 128>}, {pipeline_mode = #tpu.pipeline_mode<synchronous>, transform_indices = @transform_3, window_bounds = array<i64: 128, 128>}, {pipeline_mode = #tpu.pipeline_mode<synchronous>, transform_indices = @transform_4, window_bounds = array<i64: 1, 128>}, {transform_indices = @transform_5, window_bounds = array<i64: 16, 128>}]} {
    %c0 = arith.constant 0 : index
    %c0_0 = arith.constant 0 : index
    %0 = vector.load %arg1[%c0, %c0_0] : memref<16x24xbf16, #tpu.memory_space<vmem>>, vector<16x24xbf16>
    %c0_1 = arith.constant 0 : index
    %c0_2 = arith.constant 0 : index
    %1 = vector.load %arg2[%c0_1, %c0_2] : memref<24x128xbf16, #tpu.memory_space<vmem>>, vector<24x128xbf16>
    %cst = arith.constant dense<0.000000e+00> : vector<16x128xf32>
    %2 = tpu.matmul %0, %1, %cst {dimension_numbers = #tpu.dot_dimension_numbers<[1], [0], [0], [1], [0, 0, 1, 1], [], []>} : vector<16x24xbf16>, vector<24x128xbf16>, vector<16x128xf32> -> vector<16x128xf32>
    %c0_3 = arith.constant 0 : index
    %c0_4 = arith.constant 0 : index
    %3 = vector.load %arg3[%c0_3, %c0_4] : memref<1x128xf32, #tpu.memory_space<vmem>>, vector<1x128xf32>
    %4 = vector.broadcast %3 : vector<1x128xf32> to vector<16x128xf32>
    %5 = arith.addf %2, %4 : vector<16x128xf32>
    %cst_5 = arith.constant 0.000000e+00 : f32
    %6 = vector.broadcast %cst_5 : f32 to vector<16x128xf32>
    %7 = arith.maximumf %5, %6 : vector<16x128xf32>
    %8 = arith.truncf %7 : vector<16x128xf32> to vector<16x128xbf16>
    %c0_6 = arith.constant 0 : index
    %c0_7 = arith.constant 0 : index
    %9 = vector.load %arg4[%c0_6, %c0_7] : memref<128x128xbf16, #tpu.memory_space<vmem>>, vector<128x128xbf16>
    %cst_8 = arith.constant dense<0.000000e+00> : vector<16x128xf32>
    %10 = tpu.matmul %8, %9, %cst_8 {dimension_numbers = #tpu.dot_dimension_numbers<[1], [0], [0], [1], [0, 0, 1, 1], [], []>} : vector<16x128xbf16>, vector<128x128xbf16>, vector<16x128xf32> -> vector<16x128xf32>
    %c0_9 = arith.constant 0 : index
    %c0_10 = arith.constant 0 : index
    %11 = vector.load %arg5[%c0_9, %c0_10] : memref<1x128xf32, #tpu.memory_space<vmem>>, vector<1x128xf32>
    %12 = vector.broadcast %11 : vector<1x128xf32> to vector<16x128xf32>
    %13 = arith.addf %10, %12 : vector<16x128xf32>
    %cst_11 = arith.constant 0.000000e+00 : f32
    %14 = vector.broadcast %cst_11 : f32 to vector<16x128xf32>
    %15 = arith.maximumf %13, %14 : vector<16x128xf32>
    %c0_12 = arith.constant 0 : index
    %c0_13 = arith.constant 0 : index
    %16 = vector.load %arg6[%c0_12, %c0_13] : memref<16x128xf32, #tpu.memory_space<vmem>>, vector<16x128xf32>
    tpu.vector_store %arg6[%c0_12, %c0_13], %15 {strides = array<i32>} : memref<16x128xf32, #tpu.memory_space<vmem>>, vector<16x128xf32>,
    return
  }
  func.func @transform_0(%arg0: i32) -> (i32, i32) {
    %c0_i32 = arith.constant 0 : i32
    %c0_i32_0 = arith.constant 0 : i32
    return %arg0, %c0_i32 : i32, i32
  }
  func.func @transform_1(%arg0: i32) -> (i32, i32) {
    %c0_i32 = arith.constant 0 : i32
    %c0_i32_0 = arith.constant 0 : i32
    %c0_i32_1 = arith.constant 0 : i32
    return %c0_i32, %c0_i32_0 : i32, i32
  }
  func.func @transform_2(%arg0: i32) -> (i32, i32) {
    %c0_i32 = arith.constant 0 : i32
    %c0_i32_0 = arith.constant 0 : i32
    %c0_i32_1 = arith.constant 0 : i32
    return %c0_i32, %c0_i32_0 : i32, i32
  }
  func.func @transform_3(%arg0: i32) -> (i32, i32) {
    %c0_i32 = arith.constant 0 : i32
    %c0_i32_0 = arith.constant 0 : i32
    %c0_i32_1 = arith.constant 0 : i32
    return %c0_i32, %c0_i32_0 : i32, i32
  }
  func.func @transform_4(%arg0: i32) -> (i32, i32) {
    %c0_i32 = arith.constant 0 : i32
    %c0_i32_0 = arith.constant 0 : i32
    %c0_i32_1 = arith.constant 0 : i32
    return %c0_i32, %c0_i32_0 : i32, i32
  }
  func.func @transform_5(%arg0: i32) -> (i32, i32) {
    %c0_i32 = arith.constant 0 : i32
    %c0_i32_0 = arith.constant 0 : i32
    return %arg0, %c0_i32 : i32, i32
  }
}

</mosaic_0001>

<bundles_post_ra>
// kernel: tpu_custom_call.1
= control target key start
LH: loop header
LB: loop body
LE: loop exit
PB: predicated region body
PF: predicated region fallthrough
CT: control target
= control target key end

     0   :  { %10 = vsyncpa [#allocation3], 0  ;;  %s442_s0 = inlined_call_operand.hbm [shape: bf16[16,24], index: 0, kind: input, shape index: {}]   ;;  %s443_s1 = inlined_call_operand.hbm [shape: bf16[24,128], index: 1, kind: input, shape index: {}]   ;;  %s444_s2 = inlined_call_operand.vmem [shape: f32[1,128], index: 2, kind: input, shape index: {}]   ;;  %s445_s3 = inlined_call_operand.hbm [shape: bf16[128,128], index: 3, kind: input, shape index: {}]   ;;  %s446_s4 = inlined_call_operand.vmem [shape: f32[1,128], index: 4, kind: input, shape index: {}]   ;;  %s447_s5 = inlined_call_operand.hbm [shape: f32[16,128], index: 5, kind: output, shape index: {}]  }
   0x1   :  { %11 = vsyncpa [#allocation6], 0 }
   0x2   :  { %12 = vsyncpa [#allocation4], 0  ;;  %s30_s20 = sshll.u32 %s443_s1, 4  ;;  %s386_s21 = smov [#allocation5]   ;;  %s31_s20 = int_to_ptr.hbm [resolvable:$true] %s30_s20 }
   0x3   :  { %s32_s22 = sshll.u32 %s386_s21, 4  ;;  %s17_s25 = sshll.u32 %s442_s0, 4  ;;  %s33_s22 = int_to_ptr.vmem [resolvable:$true] %s32_s22  ;;  %s18_s25 = int_to_ptr.hbm [resolvable:$true] %s17_s25 }
   0x4   :  { %s387_s26 = smov 64   ;;  %s388_s27 = smov 4  }
   0x5   :  { %38 = dma.hbm_to_vmem [thread:$0]  %s31_s20, 192, %s33_s22, [#allocation6], %s387_s26, %s387_s26, %s388_s27  }
   0x6   :  { %s389_s28 = smov [#allocation2]   ;;  %s45_s7 = sshll.u32 %s445_s3, 4  ;;  %s46_s7 = int_to_ptr.hbm [resolvable:$true] %s45_s7 }
   0x7   :  { %s19_s29 = sshll.u32 %s389_s28, 4  ;;  %s390_s1 = smov [#allocation7]   ;;  %s20_s29 = int_to_ptr.vmem [resolvable:$true] %s19_s29 }
   0x8   :  { %25 = dma.hbm_to_vmem [thread:$0]  %s18_s25, 128, %s20_s29, [#allocation3], %s387_s26, %s387_s26, %s388_s27  }
   0x9   :  { %s47_s8 = sshll.u32 %s390_s1, 4  ;;  %s48_s8 = int_to_ptr.vmem [resolvable:$true] %s47_s8 }
   0xa   :  { %53 = dma.hbm_to_vmem [thread:$0]  %s46_s7, 1024, %s48_s8, [#allocation6], %s387_s26, %s387_s26, %s388_s27  }
   0xb   :  { %380 = dma.done.wait [#allocation3], 128  }
   0xc   :  { %381 = vsyncadd [#allocation3], 4294967168 }
   0xd   :  { %382 = dma.done.wait [#allocation6], 1216  }
   0xe   :  { %383 = vsyncadd [#allocation6], 4294966080  ;;  %v73_v0 = vld [vmem:[#allocation5 + $0x8] sm:$0xf]  ;;  %vm96_vm0 = vcmask 1043456   ;;  %v272_v4 = vld [vmem:[#allocation7 + $0x30] sm:$0xff] }
   0xf   :  { %v88_v1 = vunpack.c.l.b16 %v73_v0  ;;  %v273_v2 = vld [vmem:[#allocation7 + $0x38] sm:$0xff]  ;;  %v271_v7 = vld [vmem:[#allocation7 + $0x28] sm:$0xff]  ;;  %vm92_vm1 = vcmask 195584   ;;  %v270_v9 = vld [vmem:[#allocation7 + $0x20] sm:$0xff]  ;;  %s391_s11 = smov [#allocation8]   ;;  %s392_s15 = smov 128  }
  0x10   :  { %185 = vmatpush.bf16.msra.mxu1 %v273_v2  ;;  %v265_v6 = vld [vmem:[#allocation5] sm:$0xff]  ;;  %v264_v8 = vld [vmem:[#allocation2] sm:$0xff]  ;;  %v266_v13 = vld [vmem:[#allocation7] sm:$0xff]  ;;  %s207_s12 = sshll.u32 %s391_s11, 4  ;;  %s393_s16 = smov 8   ;;  %s208_s12 = int_to_ptr.vmem [resolvable:$true] %s207_s12 }
  0x11   :  { %v90_v3 = vpack.c.b16 %v88_v1, %v88_v1  ;;  %v269_v10 = vld [vmem:[#allocation7 + $0x18] sm:$0xff]  ;;  %v268_v11 = vld [vmem:[#allocation7 + $0x10] sm:$0xff]  ;;  %v267_v12 = vld [vmem:[#allocation7 + $0x8] sm:$0xff] }
  0x12   :  { %v282_v15 = vld [vmem:[%s444_s2] ss:$0 sm:$0xff]  ;;  %s209_s2 = sshll.u32 %s447_s5, 4  ;;  %s210_s2 = int_to_ptr.hbm [resolvable:$true] %s209_s2 }
  0x13   :  { %v98_v5 = vsel %vm96_vm0, %v90_v3, 0  ;;  %v283_v22 = vld [vmem:[%s446_s4] ss:$0 sm:$0xff] }
  0x14   :  { %106 = vmatpush.bf16.msra.mxu0 %v98_v5  ;;  %186 = vmatpush.bf16.msra.mxu1 %v272_v4 }
  0x18   :  { %107 = vmatpush.bf16.msra.mxu0 %v265_v6  ;;  %187 = vmatpush.bf16.msra.mxu1 %v271_v7 }
  0x1b   :  { %231 = vmatmul.msk.bf16.vlgmr.msra.gmra.mxu0 %vm92_vm1, %v264_v8 }
  0x1c   :  { %188 = vmatpush.bf16.msra.mxu1 %v270_v9 }
  0x20   :  { %189 = vmatpush.bf16.msra.mxu1 %v269_v10 }
  0x24   :  { %190 = vmatpush.bf16.msra.mxu1 %v268_v11 }
  0x28   :  { %191 = vmatpush.bf16.msra.mxu1 %v267_v12 }
  0x2c   :  { %192 = vmatpush.bf16.msra.mxu1 %v266_v13 }
  0x98   :  { %v109_v14 = vpop.f32.mrf.mxu0 }
  0x99   :  { %v110_v16 = vadd.f32 %v282_v15, %v109_v14 }
  0x9b   :  { %v114_v19 = vmax.f32 %v110_v16, 0.0 }
  0xa0   :  { %v111_v17 = vpop.f32.mrf.mxu0 }
  0xa1   :  { %v112_v18 = vadd.f32 %v282_v15, %v111_v17 }
  0xa3   :  { %v115_v20 = vmax.f32 %v112_v18, 0.0 }
  0xa5   :  { %v116_v21 = vpack.c.bf16 %v115_v20, %v114_v19 }
  0xa7   :  { %193 = vmatmul.bf16.vlgmr.msra.gmra.mxu1 %v116_v21 }
 0x124   :  { %v194_v23 = vpop.f32.mrf.mxu1 }
 0x125   :  { %v195_v24 = vadd.f32 %v283_v22, %v194_v23 }
 0x127   :  { %v199_v25 = vmax.f32 %v195_v24, 0.0 }
 0x129   :  { %201 = vst [vmem:[#allocation8] sm:$0xff] %v199_v25 }
 0x12c   :  { %v196_v26 = vpop.f32.mrf.mxu1 }
 0x12d   :  { %v197_v27 = vadd.f32 %v283_v22, %v196_v26 }
 0x12f   :  { %v200_v28 = vmax.f32 %v197_v27, 0.0 }
 0x131   :  { %202 = vst [vmem:[#allocation8 + $0x8] sm:$0xff] %v200_v28 }
 0x132   :  { %215 = dma.vmem_to_hbm [thread:$0]  %s208_s12, 256, %s210_s2, [#allocation4], %s392_s15, %s392_s15, %s393_s16  }
 0x133   :  { %384 = dma.done.wait [#allocation4], 256  }
 0x134   :  { %385 = vsyncadd [#allocation4], 4294967040 }
 0x135   :  { %220 = vsyncpa [#allocation3], 1 }
 0x136   :  { %221 = vsyncpa [#allocation6], 1 }
 0x137   :  { %222 = vsyncpa [#allocation4], 1 }

</bundles_post_ra>
